<compile_context>
chip_gen: v5e
topology: v5e:2x2
jax: 0.10.0
libtpu: 0.0.40
codegen_flags: <defaults>
</compile_context>

<pallas_src>
import functools

import jax
import jax.numpy as jnp
from jax.experimental import pallas as pl
from jax.experimental.pallas import tpu as pltpu

LANES = 128
SUBLANES = 8
MAX_BLOCK_ROWS = 2048  # (2048, 128) f32 tile = 1 MiB per input per buffer


def _choose_block_rows(rows, max_block_rows, min_split_rows):
    """Pick a block height (multiple of 8, <= rows, <= max_block_rows).

    Aims for >= 2 blocks as soon as each block would still get at least
    `min_split_rows` rows, so the 'parallel' grid axis can shard across both
    TensorCores on v7x; never exceeds max_block_rows (VMEM budget)."""
    max_fit = max(SUBLANES, (rows // SUBLANES) * SUBLANES)
    if rows >= 2 * min_split_rows:
        n_blocks = max(2, pl.cdiv(rows, max_block_rows))
    else:
        n_blocks = 1
    br = pl.cdiv(rows, n_blocks)
    br = ((br + SUBLANES - 1) // SUBLANES) * SUBLANES
    br = min(br, max_block_rows, max_fit)
    return max(br, SUBLANES)


def _wbpr_kernel(pos_ref, neg_ref, pw_ref, nw_ref, out_ref, *,
                 gamma, rows_total, block_rows, needs_mask):
    """One independent grid step: reduce a (block_rows, 128) tile of the four
    inputs to a packed (1, 2, 8, 128) partial numerator / denominator block.
    No cross-step carry, so the grid axis is 'parallel'."""
    p = pos_ref[...].astype(jnp.float32)
    n = neg_ref[...].astype(jnp.float32)
    pw = pw_ref[...].astype(jnp.float32)
    nw = nw_ref[...].astype(jnp.float32)

    d = p - n
    # Shared sigmoid: s_pos = 1/(1+e), s_neg = e/(1+e) with e = exp(-d).
    # Clamp d from below so exp never overflows to inf (inf * 0 = nan); for
    # d < -87 both branches already saturate at the gamma floor, so the clamp
    # is invisible in the result.
    e = jnp.exp(-jnp.maximum(d, -87.0))
    r = 1.0 / (1.0 + e)
    loss = (-jnp.log(gamma + r)) * pw + (-jnp.log(gamma + e * r)) * nw
    w = pw + nw

    if needs_mask:
        # The last block extends past the (rows_total, 128) slab; those rows
        # hold unspecified garbage -> select them to exactly 0 in both sums.
        rows_left = rows_total - pl.program_id(0) * block_rows
        row_idx = jax.lax.broadcasted_iota(jnp.int32, (block_rows, LANES), 0)
        valid = row_idx < rows_left
        loss = jnp.where(valid, loss, 0.0)
        w = jnp.where(valid, w, 0.0)

    # (block_rows,128) -> (block_rows/8, 8, 128) is tile-aligned (no relayout);
    # the axis-0 sum is pure whole-vreg VPU adds. The expensive cross-lane
    # reduce happens once, outside the kernel, on the tiny partials.
    out_ref[0, 0, :, :] = jnp.sum(loss.reshape(-1, SUBLANES, LANES), axis=0)
    out_ref[0, 1, :, :] = jnp.sum(w.reshape(-1, SUBLANES, LANES), axis=0)


def wbpr_loss(pos_score, neg_score, pos_weights, neg_weights, gamma=1e-10,
              max_block_rows=MAX_BLOCK_ROWS, min_split_rows=512):
    assert pos_score.shape == neg_score.shape == pos_weights.shape == neg_weights.shape
    assert pos_score.ndim == 1
    n = pos_score.shape[0]

    rows = max(pl.cdiv(n, LANES), SUBLANES)          # minimal: no block rounding
    total = rows * LANES
    block_rows = _choose_block_rows(rows, max_block_rows, min_split_rows)
    grid = pl.cdiv(rows, block_rows)
    needs_mask = (rows % block_rows) != 0

    def to_slab(x):
        if total != n:
            # TODO(synk): for N not a multiple of 128 this pad is one extra HBM
            # read+write pass; a 1-D / manual-DMA tail path would remove it.
            x = jnp.pad(x, (0, total - n))
        return x.reshape(rows, LANES)  # free (metadata-only) when total == n

    p2, n2, pw2, nw2 = (to_slab(x) for x in
                        (pos_score, neg_score, pos_weights, neg_weights))

    tile_spec = pl.BlockSpec((block_rows, LANES), lambda i: (i, 0))
    out_spec = pl.BlockSpec((1, 2, SUBLANES, LANES), lambda i: (i, 0, 0, 0))
    out_shape = jax.ShapeDtypeStruct((grid, 2, SUBLANES, LANES), jnp.float32)

    in_bytes = sum(int(x.size) * jnp.dtype(x.dtype).itemsize
                   for x in (p2, n2, pw2, nw2))
    buf_bytes = 4 * 2 * block_rows * LANES * 4       # inputs, double-buffered
    vmem_limit = int(min(max(32 << 20, buf_bytes + (buf_bytes >> 1)), 100 << 20))

    parts = pl.pallas_call(
        functools.partial(_wbpr_kernel, gamma=float(gamma), rows_total=rows,
                          block_rows=block_rows, needs_mask=needs_mask),
        out_shape=out_shape,
        grid_spec=pltpu.PrefetchScalarGridSpec(
            num_scalar_prefetch=0,
            grid=(grid,),
            in_specs=[tile_spec, tile_spec, tile_spec, tile_spec],
            out_specs=out_spec,
        ),
        compiler_params=pltpu.CompilerParams(
            dimension_semantics=("parallel",),
            vmem_limit_bytes=vmem_limit,
        ),
        cost_estimate=pl.CostEstimate(
            flops=10 * total,
            transcendentals=3 * total,
            bytes_accessed=in_bytes + 2 * grid * SUBLANES * LANES * 4,
        ),
    )(p2, n2, pw2, nw2)

    # Tiny final reduction + divide in JAX (cross-lane reduce over the small
    # per-block partials; also avoids a serial scalar carry across the grid).
    sums = parts.sum(axis=(0, 2, 3))
    return sums[0] / sums[1]


def _reference(pos_score, neg_score, pos_weights, neg_weights, gamma=1e-10):
    pos_loss = -jnp.log(gamma + jax.nn.sigmoid(pos_score - neg_score)) * pos_weights
    neg_loss = -jnp.log(gamma + jax.nn.sigmoid(neg_score - pos_score)) * neg_weights
    return (pos_loss.sum() + neg_loss.sum()) / (pos_weights.sum() + neg_weights.sum())


if __name__ == "__main__":
    key = jax.random.PRNGKey(0)

    def make_inputs(k, n):
        k1, k2, k3, k4 = jax.random.split(k, 4)
        return (jax.random.normal(k1, (n,), dtype=jnp.float32),
                jax.random.normal(k2, (n,), dtype=jnp.float32),
                jax.random.uniform(k3, (n,), dtype=jnp.float32, minval=0.1, maxval=1.0),
                jax.random.uniform(k4, (n,), dtype=jnp.float32, minval=0.1, maxval=1.0))

    # (N, max_block_rows, min_split_rows):
    #   (8, ...)      tiny, padded to one (8,128) tile
    #   (2048, ...)   128-aligned -> zero-copy reshape, single block
    #   (3000, ...)   unaligned -> minimal pad to next 128 multiple
    #   (1152, 8, .)  rows=9, block=8 -> 2 blocks, masked partial last block, no pad
    #   (4096, 8, 8)  rows=32 -> 4 blocks, multi-block 'parallel' path, no mask
    cases = [
        (8, MAX_BLOCK_ROWS, 512),
        (2048, MAX_BLOCK_ROWS, 512),
        (3000, MAX_BLOCK_ROWS, 512),
        (1152, 8, 512),
        (4096, 8, 8),
    ]
    for idx, (N, mbr, msr) in enumerate(cases):
        args = make_inputs(jax.random.fold_in(key, idx), N)
        loss = jax.block_until_ready(
            wbpr_loss(*args, max_block_rows=mbr, min_split_rows=msr))
        ref = _reference(*args)
        assert jnp.allclose(loss, ref, rtol=1e-5, atol=1e-6), (N, loss, ref)

    print("KERNEL_OK")
</pallas_src>

<mosaic_0001>
module attributes {stable_mosaic.version = 11 : i64} {
  func.func @_wbpr_kernel(%arg0: i32, %arg1: memref<8x128xf32, #tpu.memory_space<vmem>>, %arg2: memref<8x128xf32, #tpu.memory_space<vmem>>, %arg3: memref<8x128xf32, #tpu.memory_space<vmem>>, %arg4: memref<8x128xf32, #tpu.memory_space<vmem>>, %arg5: memref<1x2x8x128xf32, #tpu.memory_space<vmem>>) attributes {dimension_semantics = [#tpu.dimension_semantics<parallel>], iteration_bounds = array<i64: 1>, scalar_prefetch = 0 : i64, scratch_operands = 0 : i64, tpu.core_type = #tpu.core_type<tc>, window_params = [{transform_indices = @transform_0, window_bounds = array<i64: 8, 128>}, {transform_indices = @transform_1, window_bounds = array<i64: 8, 128>}, {transform_indices = @transform_2, window_bounds = array<i64: 8, 128>}, {transform_indices = @transform_3, window_bounds = array<i64: 8, 128>}, {transform_indices = @transform_4, window_bounds = array<i64: 1, 2, 8, 128>}]} {
    %c0 = arith.constant 0 : index
    %c0_0 = arith.constant 0 : index
    %0 = vector.load %arg1[%c0, %c0_0] : memref<8x128xf32, #tpu.memory_space<vmem>>, vector<8x128xf32>
    %c0_1 = arith.constant 0 : index
    %c0_2 = arith.constant 0 : index
    %1 = vector.load %arg2[%c0_1, %c0_2] : memref<8x128xf32, #tpu.memory_space<vmem>>, vector<8x128xf32>
    %c0_3 = arith.constant 0 : index
    %c0_4 = arith.constant 0 : index
    %2 = vector.load %arg3[%c0_3, %c0_4] : memref<8x128xf32, #tpu.memory_space<vmem>>, vector<8x128xf32>
    %c0_5 = arith.constant 0 : index
    %c0_6 = arith.constant 0 : index
    %3 = vector.load %arg4[%c0_5, %c0_6] : memref<8x128xf32, #tpu.memory_space<vmem>>, vector<8x128xf32>
    %4 = arith.subf %0, %1 : vector<8x128xf32>
    %cst = arith.constant -8.700000e+01 : f32
    %5 = vector.broadcast %cst : f32 to vector<8x128xf32>
    %6 = arith.maximumf %4, %5 : vector<8x128xf32>
    %cst_7 = arith.constant 0.000000e+00 : f32
    %7 = vector.broadcast %cst_7 : f32 to vector<8x128xf32>
    %8 = arith.subf %7, %6 : vector<8x128xf32>
    %9 = math.exp %8 : vector<8x128xf32>
    %cst_8 = arith.constant 1.000000e+00 : f32
    %10 = vector.broadcast %cst_8 : f32 to vector<8x128xf32>
    %11 = arith.addf %10, %9 : vector<8x128xf32>
    %cst_9 = arith.constant 1.000000e+00 : f32
    %12 = vector.broadcast %cst_9 : f32 to vector<8x128xf32>
    %13 = arith.divf %12, %11 : vector<8x128xf32>
    %cst_10 = arith.constant 1.000000e-10 : f32
    %14 = vector.broadcast %cst_10 : f32 to vector<8x128xf32>
    %15 = arith.addf %14, %13 : vector<8x128xf32>
    %16 = math.log %15 : vector<8x128xf32>
    %cst_11 = arith.constant 0.000000e+00 : f32
    %17 = vector.broadcast %cst_11 : f32 to vector<8x128xf32>
    %18 = arith.subf %17, %16 : vector<8x128xf32>
    %19 = arith.mulf %18, %2 : vector<8x128xf32>
    %20 = arith.mulf %9, %13 : vector<8x128xf32>
    %cst_12 = arith.constant 1.000000e-10 : f32
    %21 = vector.broadcast %cst_12 : f32 to vector<8x128xf32>
    %22 = arith.addf %21, %20 : vector<8x128xf32>
    %23 = math.log %22 : vector<8x128xf32>
    %cst_13 = arith.constant 0.000000e+00 : f32
    %24 = vector.broadcast %cst_13 : f32 to vector<8x128xf32>
    %25 = arith.subf %24, %23 : vector<8x128xf32>
    %26 = arith.mulf %25, %3 : vector<8x128xf32>
    %27 = arith.addf %19, %26 : vector<8x128xf32>
    %28 = arith.addf %2, %3 : vector<8x128xf32>
    %29 = vector.shape_cast %27 : vector<8x128xf32> to vector<1x8x128xf32>
    %cst_14 = arith.constant dense<0.000000e+00> : vector<8x128xf32>
    %30 = vector.multi_reduction <add>, %29, %cst_14 [0] : vector<1x8x128xf32> to vector<8x128xf32>
    %c0_15 = arith.constant 0 : index
    %c0_16 = arith.constant 0 : index
    %c0_17 = arith.constant 0 : index
    %c0_18 = arith.constant 0 : index
    %31 = vector.load %arg5[%c0_15, %c0_16, %c0_17, %c0_18] : memref<1x2x8x128xf32, #tpu.memory_space<vmem>>, vector<1x1x8x128xf32>
    %32 = vector.shape_cast %31 : vector<1x1x8x128xf32> to vector<8x128xf32>
    %33 = vector.shape_cast %30 : vector<8x128xf32> to vector<1x1x8x128xf32>
    tpu.vector_store %arg5[%c0_15, %c0_16, %c0_17, %c0_18], %33 {strides = array<i32>} : memref<1x2x8x128xf32, #tpu.memory_space<vmem>>, vector<1x1x8x128xf32>,
    %34 = vector.shape_cast %28 : vector<8x128xf32> to vector<1x8x128xf32>
    %cst_19 = arith.constant dense<0.000000e+00> : vector<8x128xf32>
    %35 = vector.multi_reduction <add>, %34, %cst_19 [0] : vector<1x8x128xf32> to vector<8x128xf32>
    %c0_20 = arith.constant 0 : index
    %c1 = arith.constant 1 : index
    %c0_21 = arith.constant 0 : index
    %c0_22 = arith.constant 0 : index
    %36 = vector.load %arg5[%c0_20, %c1, %c0_21, %c0_22] : memref<1x2x8x128xf32, #tpu.memory_space<vmem>>, vector<1x1x8x128xf32>
    %37 = vector.shape_cast %36 : vector<1x1x8x128xf32> to vector<8x128xf32>
    %38 = vector.shape_cast %35 : vector<8x128xf32> to vector<1x1x8x128xf32>
    tpu.vector_store %arg5[%c0_20, %c1, %c0_21, %c0_22], %38 {strides = array<i32>} : memref<1x2x8x128xf32, #tpu.memory_space<vmem>>, vector<1x1x8x128xf32>,
    return
  }
  func.func @transform_0(%arg0: i32) -> (i32, i32) {
    %c0_i32 = arith.constant 0 : i32
    %c0_i32_0 = arith.constant 0 : i32
    return %arg0, %c0_i32 : i32, i32
  }
  func.func @transform_1(%arg0: i32) -> (i32, i32) {
    %c0_i32 = arith.constant 0 : i32
    %c0_i32_0 = arith.constant 0 : i32
    return %arg0, %c0_i32 : i32, i32
  }
  func.func @transform_2(%arg0: i32) -> (i32, i32) {
    %c0_i32 = arith.constant 0 : i32
    %c0_i32_0 = arith.constant 0 : i32
    return %arg0, %c0_i32 : i32, i32
  }
  func.func @transform_3(%arg0: i32) -> (i32, i32) {
    %c0_i32 = arith.constant 0 : i32
    %c0_i32_0 = arith.constant 0 : i32
    return %arg0, %c0_i32 : i32, i32
  }
  func.func @transform_4(%arg0: i32) -> (i32, i32, i32, i32) {
    %c0_i32 = arith.constant 0 : i32
    %c0_i32_0 = arith.constant 0 : i32
    %c0_i32_1 = arith.constant 0 : i32
    %c0_i32_2 = arith.constant 0 : i32
    return %arg0, %c0_i32, %c0_i32_0, %c0_i32_1 : i32, i32, i32, i32
  }
}

</mosaic_0001>

<bundles_post_ra>
// kernel: tpu_custom_call.1
= control target key start
LH: loop header
LB: loop body
LE: loop exit
PB: predicated region body
PF: predicated region fallthrough
CT: control target
= control target key end

     0   :  { %9 = vsyncpa [#allocation3], 0  ;;  %s327_s0 = inlined_call_operand.hbm [shape: f32[8,128], index: 0, kind: input, shape index: {}]   ;;  %s328_s1 = inlined_call_operand.hbm [shape: f32[8,128], index: 1, kind: input, shape index: {}]   ;;  %s329_s2 = inlined_call_operand.hbm [shape: f32[8,128], index: 2, kind: input, shape index: {}]   ;;  %s330_s3 = inlined_call_operand.hbm [shape: f32[8,128], index: 3, kind: input, shape index: {}]   ;;  %s331_s4 = inlined_call_operand.hbm [shape: f32[1,2,8,128], index: 4, kind: output, shape index: {}]  }
   0x1   :  { %10 = vsyncpa [#allocation6], 0 }
   0x2   :  { %11 = vsyncpa [#allocation9], 0  ;;  %s29_s17 = sshll.u32 %s328_s1, 4  ;;  %s30_s17 = int_to_ptr.hbm [resolvable:$true] %s29_s17 }
   0x3   :  { %12 = vsyncpa [#allocation4], 0  ;;  %s280_s18 = smov [#allocation5]   ;;  %s18_s22 = sshll.u32 %s327_s0, 4  ;;  %s19_s22 = int_to_ptr.hbm [resolvable:$true] %s18_s22 }
   0x4   :  { %s31_s19 = sshll.u32 %s280_s18, 4  ;;  %s281_s23 = smov [#allocation2]   ;;  %s32_s19 = int_to_ptr.vmem [resolvable:$true] %s31_s19 }
   0x5   :  { %34 = dma.hbm_to_vmem [thread:$0]  %s30_s17, 128, %s32_s19, [#allocation6]  }
   0x6   :  { %s20_s24 = sshll.u32 %s281_s23, 4  ;;  %s40_s27 = sshll.u32 %s329_s2, 4  ;;  %s21_s24 = int_to_ptr.vmem [resolvable:$true] %s20_s24  ;;  %s41_s27 = int_to_ptr.hbm [resolvable:$true] %s40_s27 }
   0x7   :  { %23 = dma.hbm_to_vmem [thread:$0]  %s19_s22, 128, %s21_s24, [#allocation3]  }
   0x8   :  { %s51_s29 = sshll.u32 %s330_s3, 4  ;;  %s282_s30 = smov [#allocation7]   ;;  %s52_s29 = int_to_ptr.hbm [resolvable:$true] %s51_s29 }
   0x9   :  { %s42_s5 = sshll.u32 %s282_s30, 4  ;;  %s283_s0 = smov [#allocation8]   ;;  %s43_s5 = int_to_ptr.vmem [resolvable:$true] %s42_s5 }
   0xa   :  { %45 = dma.hbm_to_vmem [thread:$0]  %s41_s27, 128, %s43_s5, [#allocation6]  }
   0xb   :  { %s53_s6 = sshll.u32 %s283_s0, 4  ;;  %s54_s6 = int_to_ptr.vmem [resolvable:$true] %s53_s6 }
   0xc   :  { %56 = dma.hbm_to_vmem [thread:$0]  %s52_s29, 128, %s54_s6, [#allocation9]  }
   0xd   :  { %272 = dma.done.wait [#allocation3], 128  }
   0xe   :  { %273 = vsyncadd [#allocation3], 4294967168 }
   0xf   :  { %274 = dma.done.wait [#allocation6], 256  }
  0x10   :  { %275 = vsyncadd [#allocation6], 4294967040 }
  0x11   :  { %276 = dma.done.wait [#allocation9], 128  }
  0x12   :  { %277 = vsyncadd [#allocation9], 4294967168  ;;  %v73_v0 = vld [vmem:[#allocation2] sm:$0xff]  ;;  %v74_v1 = vld [vmem:[#allocation5] sm:$0xff]  ;;  %s284_s2 = smov [#allocation10]   ;;  %s122_s9 = sshll.u32 %s331_s4, 4  ;;  %s123_s9 = int_to_ptr.hbm [resolvable:$true] %s122_s9 }
  0x13   :  { %v77_v2 = vsub.f32 %v73_v0, %v74_v1  ;;  %v75_v8 = vld [vmem:[#allocation7] sm:$0xff]  ;;  %v76_v9 = vld [vmem:[#allocation8] sm:$0xff]  ;;  %s120_s3 = sshll.u32 %s284_s2, 4  ;;  %s285_s10 = smov 128   ;;  %s121_s3 = int_to_ptr.vmem [resolvable:$true] %s120_s3 }
  0x14   :  { %v110_v10 = vadd.f32 %v76_v9, %v75_v8  ;;  %s286_s11 = smov 8  }
  0x15   :  { %v78_v3 = vmax.f32 %v77_v2, -87.0 }
  0x16   :  { %115 = vst [vmem:[#allocation10 + $0x8] sm:$0xff] %v110_v10 }
  0x17   :  { %v79_v4 = vsub.f32 0.0, %v78_v3 }
  0x19   :  { %v80_v5 = vmul.f32 1.442695, %v79_v4 }
  0x1b   :  { %144 = vpow2.f32 %v80_v5 }
  0x21   :  { %v145_v6 = vpop.eup %144 }
  0x22   :  { %v82_v7 = vadd.f32 1.0, %v145_v6 }
  0x24   :  { %146 = vrcp.f32 %v82_v7  ;;  %v94_v13 = vand.u32 2147483648, %v82_v7  ;;  %vm88_vm0 = vweird.f32 %v82_v7  ;;  %v92_v15 = vand.u32 2147483647, %v82_v7 }
  0x26   :  { %v95_v17 = vor.u32 1.1754944e-38, %v94_v13  ;;  %vm93_vm3 = vcmp.eq.f32.partialorder %v92_v15, 8.507059e+37 }
  0x2a   :  { %v147_v11 = vpop.eup %146 }
  0x2b   :  { %v84_v12 = vmul.f32 %v147_v11, %v82_v7  ;;  %vm89_vm1 = vweird.f32 %v147_v11 }
  0x2c   :  { %vm90_vm2 = vmor %vm88_vm0, %vm89_vm1 }
  0x2d   :  { %v85_v14 = vsub.f32 1.0, %v84_v12 }
  0x2f   :  { %v86_v16 = vmul.f32 %v147_v11, %v85_v14 }
  0x31   :  { %v87_v18 = vadd.f32 %v147_v11, %v86_v16 }
  0x33   :  { %v91_v19 = vsel %vm90_vm2, %v147_v11, %v87_v18 }
  0x34   :  { %v96_v20 = vsel %vm93_vm3, %v95_v17, %v91_v19 }
  0x35   :  { %v98_v21 = vadd.f32 1e-10, %v96_v20  ;;  %v103_v22 = vmul.f32 %v145_v6, %v96_v20 }
  0x37   :  { %148 = vlog2.f32 %v98_v21  ;;  %v104_v23 = vadd.f32 1e-10, %v103_v22 }
  0x39   :  { %150 = vlog2.f32 %v104_v23 }
  0x3d   :  { %v149_v24 = vpop.eup %148 }
  0x3e   :  { %v100_v25 = vmul.f32 0.6931472, %v149_v24 }
  0x3f   :  { %v151_v26 = vpop.eup %150 }
  0x40   :  { %v101_v27 = vsub.f32 0.0, %v100_v25  ;;  %v106_v28 = vmul.f32 0.6931472, %v151_v26 }
  0x42   :  { %v102_v29 = vmul.f32 %v101_v27, %v75_v8  ;;  %v107_v30 = vsub.f32 0.0, %v106_v28 }
  0x44   :  { %v108_v31 = vmul.f32 %v107_v30, %v76_v9 }
  0x46   :  { %v109_v32 = vadd.f32 %v108_v31, %v102_v29 }
  0x48   :  { %112 = vst [vmem:[#allocation10] sm:$0xff] %v109_v32 }
  0x49   :  { %128 = dma.vmem_to_hbm [thread:$0]  %s121_s3, 256, %s123_s9, [#allocation4], %s285_s10, %s285_s10, %s286_s11  }
  0x4a   :  { %278 = dma.done.wait [#allocation4], 256  }
  0x4b   :  { %279 = vsyncadd [#allocation4], 4294967040 }
  0x4c   :  { %133 = vsyncpa [#allocation3], 1 }
  0x4d   :  { %134 = vsyncpa [#allocation6], 1 }
  0x4e   :  { %135 = vsyncpa [#allocation9], 1 }
  0x4f   :  { %136 = vsyncpa [#allocation4], 1 }

</bundles_post_ra>
